<compile_context>
chip_gen: v7x
topology: tpu7x:2x2x1
jax: 0.10.0
libtpu: 0.0.40
codegen_flags: <defaults>
</compile_context>

<pallas_src>
import jax
import jax.numpy as jnp
import numpy as np
from jax.experimental import pallas as pl
from jax.experimental.pallas import tpu as pltpu

VOCAB = 28
LAYERS = [28, 16, 8]
KSIZE = 3


# ---------------------------------------------------------------------------
# Fused Pallas kernel (one batch element per grid step)
# ---------------------------------------------------------------------------
def _tcn_fused_kernel(x_ref, fc_ref,
                      w1_ref, b1_ref, w2_ref, b2_ref, w3_ref, b3_ref,
                      wc_ref, bc_ref,
                      o_ref,
                      p1_ref, p2_ref, p3_ref):
    """Fused TCN forward for one batch element (NCL layout, L on lanes).

    x_ref : (1, 28, L)        one-hot input
    fc_ref: (1, 28, 1)        precomputed random first-char column
    w*_ref: (3, Cout, Cin)    conv taps; b*_ref: (Cout, 1)
    wc_ref: (28, 8)           1x1 classifier; bc_ref: (28, 1)
    o_ref : (1, 28, L + 1)
    p*_ref: VMEM scratch (Cin, L + 2*dilation) holding the causally padded input
    """
    L = x_ref.shape[2]

    def conv_relu(pad_ref, w_ref, b_ref, dilation):
        # pad_ref: (Cin, L + 2*dilation); out[:, t] = relu(b + sum_k W_k @ pad[:, t + k*d])
        acc = b_ref[...]                                          # (Cout, 1) broadcasts over L
        for k in range(KSIZE):
            tap = pad_ref[:, k * dilation: k * dilation + L]      # static lane-slice load
            acc = acc + jnp.dot(w_ref[k], tap,
                                preferred_element_type=jnp.float32)
        return jnp.maximum(acc, 0.0)                              # (Cout, L)

    # block 1: 28 -> 28, dilation 1, causal left pad 2
    p1_ref[:, 0:2] = jnp.zeros((VOCAB, 2), jnp.float32)
    p1_ref[:, 2:] = x_ref[0]
    h = conv_relu(p1_ref, w1_ref, b1_ref, 1)                      # (28, L)

    # block 2: 28 -> 16, dilation 2, causal left pad 4
    p2_ref[:, 0:4] = jnp.zeros((VOCAB, 4), jnp.float32)
    p2_ref[:, 4:] = h
    h = conv_relu(p2_ref, w2_ref, b2_ref, 2)                      # (16, L)

    # block 3: 16 -> 8, dilation 4, causal left pad 8
    p3_ref[:, 0:8] = jnp.zeros((LAYERS[1], 8), jnp.float32)
    p3_ref[:, 8:] = h
    h = conv_relu(p3_ref, w3_ref, b3_ref, 4)                      # (8, L)

    # 1x1 classifier: (28, 8) @ (8, L) + bias
    logits = jnp.dot(wc_ref[...], h, preferred_element_type=jnp.float32) + bc_ref[...]

    # final output, produced lane-dense in its final layout:
    # column 0 = random first-char distribution, columns 1..L = logits
    o_ref[0, :, 0:1] = fc_ref[0]
    o_ref[0, :, 1:] = logits


# ---------------------------------------------------------------------------
# Parameter construction (PyTorch Conv1d layout) + one-time repack for the kernel
# ---------------------------------------------------------------------------
def init_params(key):
    """Weights in PyTorch Conv1d layout: w (Cout, Cin, K), b (Cout,)."""
    blocks = []
    c = VOCAB
    for l in LAYERS:
        key, kw, kb = jax.random.split(key, 3)
        w = jax.random.normal(kw, (l, c, KSIZE), jnp.float32) * 0.1
        b = jax.random.normal(kb, (l,), jnp.float32) * 0.1
        blocks.append((w, b))
        c = l
    key, kw, kb = jax.random.split(key, 3)
    wc = jax.random.normal(kw, (VOCAB, c, 1), jnp.float32) * 0.1       # (28, 8, 1)
    bc = jax.random.normal(kb, (VOCAB,), jnp.float32) * 0.1
    return {"blocks": blocks, "cls_w": wc, "cls_b": bc}


def pack_params(params):
    """Repack torch-layout weights for the kernel. Done once, outside the hot path."""
    blocks = []
    for w, b in params["blocks"]:
        cout = w.shape[0]
        blocks.append((jnp.transpose(w, (2, 0, 1)),        # (K, Cout, Cin)
                       b.reshape(cout, 1)))                 # (Cout, 1)
    return {
        "blocks": blocks,
        "cls_w": params["cls_w"][:, :, 0],                  # (28, 8)
        "cls_b": params["cls_b"].reshape(VOCAB, 1),          # (28, 1)
    }


# ---------------------------------------------------------------------------
# Full TCN.forward (single fused pallas_call)
# ---------------------------------------------------------------------------
def tcn_forward(x_ncl, kparams, first_char_key):
    """x_ncl: (B, 28, L) float32 (PyTorch NCL layout). Returns (B, 28, L+1)."""
    B, V, L = x_ncl.shape
    # The original module draws a fresh torch.rand Parameter every forward call;
    # we reproduce it as a deterministic uniform(0,1) column fed to the kernel.
    # TODO(synk): a per-call re-randomized nn.Parameter has no trained-weight equivalent.
    first_char = jax.random.uniform(first_char_key, (B, V, 1), jnp.float32)

    (w1, b1), (w2, b2), (w3, b3) = kparams["blocks"]
    wc, bc = kparams["cls_w"], kparams["cls_b"]

    def _resident2(shape):
        return pl.BlockSpec(shape, lambda b: (0, 0))

    def _resident3(shape):
        return pl.BlockSpec(shape, lambda b: (0, 0, 0))

    flops = 2 * B * L * (3 * 28 * 28 + 3 * 28 * 16 + 3 * 16 * 8 + 8 * 28)
    bytes_accessed = 4 * (B * V * L + B * V * (L + 1) + B * V
                          + w1.size + b1.size + w2.size + b2.size
                          + w3.size + b3.size + wc.size + bc.size)

    return pl.pallas_call(
        _tcn_fused_kernel,
        out_shape=jax.ShapeDtypeStruct((B, V, L + 1), jnp.float32),
        grid=(B,),
        in_specs=[
            pl.BlockSpec((1, V, L), lambda b: (b, 0, 0)),      # x: one batch row per step
            pl.BlockSpec((1, V, 1), lambda b: (b, 0, 0)),      # first-char column
            _resident3(w1.shape), _resident2(b1.shape),
            _resident3(w2.shape), _resident2(b2.shape),
            _resident3(w3.shape), _resident2(b3.shape),
            _resident2(wc.shape), _resident2(bc.shape),
        ],
        out_specs=pl.BlockSpec((1, V, L + 1), lambda b: (b, 0, 0)),
        scratch_shapes=[
            pltpu.VMEM((VOCAB, L + 2), jnp.float32),           # padded input, block 1
            pltpu.VMEM((VOCAB, L + 4), jnp.float32),           # padded input, block 2
            pltpu.VMEM((LAYERS[1], L + 8), jnp.float32),       # padded input, block 3
        ],
        compiler_params=pltpu.CompilerParams(
            dimension_semantics=("parallel",),                 # v7x: split batch over both TCs
            vmem_limit_bytes=32 * 1024 * 1024,
        ),
        cost_estimate=pl.CostEstimate(
            flops=int(flops), transcendentals=0, bytes_accessed=int(bytes_accessed)),
    )(x_ncl, first_char, w1, b1, w2, b2, w3, b3, wc, bc)


# ---------------------------------------------------------------------------
# Pure-JAX reference (direct PyTorch-style math on torch-layout weights)
# ---------------------------------------------------------------------------
def tcn_forward_ref(x_ncl, params, first_char_key):
    B, V, L = x_ncl.shape
    h = x_ncl
    dilation = 1
    for w, b in params["blocks"]:                  # w: (Cout, Cin, 3), b: (Cout,)
        pad = 2 * dilation
        hp = jnp.pad(h, ((0, 0), (0, 0), (pad, 0)))
        acc = b[None, :, None]
        for k in range(KSIZE):
            acc = acc + jnp.einsum("oc,bcl->bol", w[:, :, k],
                                   hp[:, :, k * dilation: k * dilation + L])
        h = jnp.maximum(acc, 0.0)
        dilation *= 2
    logits = (jnp.einsum("oc,bcl->bol", params["cls_w"][:, :, 0], h)
              + params["cls_b"][None, :, None])
    first_char = jax.random.uniform(first_char_key, (B, V, 1), jnp.float32)
    return jnp.concatenate([first_char, logits], axis=2)


if __name__ == "__main__":
    key = jax.random.PRNGKey(0)
    key_params, key_x, key_fc = jax.random.split(key, 3)

    B, L = 2, 16
    params = init_params(key_params)
    kparams = pack_params(params)

    # One-hot batch of "text": random character indices, NCL layout like PyTorch.
    idx = jax.random.randint(key_x, (B, L), 0, VOCAB)
    x = jnp.transpose(jax.nn.one_hot(idx, VOCAB, dtype=jnp.float32), (0, 2, 1))   # (B, 28, L)

    out = jax.block_until_ready(tcn_forward(x, kparams, key_fc))
    assert out.shape == (B, VOCAB, L + 1), out.shape

    ref = jax.block_until_ready(tcn_forward_ref(x, params, key_fc))
    np.testing.assert_allclose(np.asarray(out), np.asarray(ref), rtol=1e-5, atol=1e-5)

    print("KERNEL_OK")
</pallas_src>

<mosaic_0001>
module attributes {stable_mosaic.version = 11 : i64} {
  func.func @_tcn_fused_kernel(%arg0: i32, %arg1: memref<1x28x16xf32, #tpu.memory_space<vmem>>, %arg2: memref<1x28x1xf32, #tpu.memory_space<vmem>>, %arg3: memref<3x28x28xf32, #tpu.memory_space<vmem>>, %arg4: memref<28x1xf32, #tpu.memory_space<vmem>>, %arg5: memref<3x16x28xf32, #tpu.memory_space<vmem>>, %arg6: memref<16x1xf32, #tpu.memory_space<vmem>>, %arg7: memref<3x8x16xf32, #tpu.memory_space<vmem>>, %arg8: memref<8x1xf32, #tpu.memory_space<vmem>>, %arg9: memref<28x8xf32, #tpu.memory_space<vmem>>, %arg10: memref<28x1xf32, #tpu.memory_space<vmem>>, %arg11: memref<1x28x17xf32, #tpu.memory_space<vmem>>, %arg12: memref<28x18xf32, #tpu.memory_space<vmem>>, %arg13: memref<28x20xf32, #tpu.memory_space<vmem>>, %arg14: memref<16x24xf32, #tpu.memory_space<vmem>>) attributes {dimension_semantics = [#tpu.dimension_semantics<parallel>], iteration_bounds = array<i64: 2>, scalar_prefetch = 0 : i64, scratch_operands = 3 : i64, tpu.core_type = #tpu.core_type<tc>, window_params = [{transform_indices = @transform_0, window_bounds = array<i64: 1, 28, 16>}, {transform_indices = @transform_1, window_bounds = array<i64: 1, 28, 1>}, {pipeline_mode = #tpu.pipeline_mode<synchronous>, transform_indices = @transform_2, window_bounds = array<i64: 3, 28, 28>}, {pipeline_mode = #tpu.pipeline_mode<synchronous>, transform_indices = @transform_3, window_bounds = array<i64: 28, 1>}, {pipeline_mode = #tpu.pipeline_mode<synchronous>, transform_indices = @transform_4, window_bounds = array<i64: 3, 16, 28>}, {pipeline_mode = #tpu.pipeline_mode<synchronous>, transform_indices = @transform_5, window_bounds = array<i64: 16, 1>}, {pipeline_mode = #tpu.pipeline_mode<synchronous>, transform_indices = @transform_6, window_bounds = array<i64: 3, 8, 16>}, {pipeline_mode = #tpu.pipeline_mode<synchronous>, transform_indices = @transform_7, window_bounds = array<i64: 8, 1>}, {pipeline_mode = #tpu.pipeline_mode<synchronous>, transform_indices = @transform_8, window_bounds = array<i64: 28, 8>}, {pipeline_mode = #tpu.pipeline_mode<synchronous>, transform_indices = @transform_9, window_bounds = array<i64: 28, 1>}, {transform_indices = @transform_10, window_bounds = array<i64: 1, 28, 17>}]} {
    %cst = arith.constant 0.000000e+00 : f32
    %0 = vector.broadcast %cst : f32 to vector<28x2xf32>
    %c0 = arith.constant 0 : index
    %c0_0 = arith.constant 0 : index
    %1 = vector.load %arg12[%c0, %c0_0] : memref<28x18xf32, #tpu.memory_space<vmem>>, vector<28x2xf32>
    tpu.vector_store %arg12[%c0, %c0_0], %0 {strides = array<i32>} : memref<28x18xf32, #tpu.memory_space<vmem>>, vector<28x2xf32>,
    %c0_1 = arith.constant 0 : index
    %c0_2 = arith.constant 0 : index
    %c0_3 = arith.constant 0 : index
    %2 = vector.load %arg1[%c0_1, %c0_2, %c0_3] : memref<1x28x16xf32, #tpu.memory_space<vmem>>, vector<1x28x16xf32>
    %3 = vector.shape_cast %2 : vector<1x28x16xf32> to vector<28x16xf32>
    %c0_4 = arith.constant 0 : index
    %c2 = arith.constant 2 : index
    %4 = vector.load %arg12[%c0_4, %c2] : memref<28x18xf32, #tpu.memory_space<vmem>>, vector<28x16xf32>
    tpu.vector_store %arg12[%c0_4, %c2], %3 {strides = array<i32>} : memref<28x18xf32, #tpu.memory_space<vmem>>, vector<28x16xf32>,
    %c0_5 = arith.constant 0 : index
    %c0_6 = arith.constant 0 : index
    %5 = vector.load %arg4[%c0_5, %c0_6] : memref<28x1xf32, #tpu.memory_space<vmem>>, vector<28x1xf32>
    %c0_7 = arith.constant 0 : index
    %c0_8 = arith.constant 0 : index
    %6 = vector.load %arg12[%c0_7, %c0_8] : memref<28x18xf32, #tpu.memory_space<vmem>>, vector<28x16xf32>
    %c0_9 = arith.constant 0 : index
    %c0_10 = arith.constant 0 : index
    %c0_11 = arith.constant 0 : index
    %7 = vector.load %arg3[%c0_9, %c0_10, %c0_11] : memref<3x28x28xf32, #tpu.memory_space<vmem>>, vector<1x28x28xf32>
    %8 = vector.shape_cast %7 : vector<1x28x28xf32> to vector<28x28xf32>
    %cst_12 = arith.constant dense<0.000000e+00> : vector<28x16xf32>
    %9 = tpu.matmul %8, %6, %cst_12 {dimension_numbers = #tpu.dot_dimension_numbers<[1], [0], [0], [1], [0, 0, 1, 1], [], []>} : vector<28x28xf32>, vector<28x16xf32>, vector<28x16xf32> -> vector<28x16xf32>
    %10 = vector.broadcast %5 : vector<28x1xf32> to vector<28x16xf32>
    %11 = arith.addf %10, %9 : vector<28x16xf32>
    %c0_13 = arith.constant 0 : index
    %c1 = arith.constant 1 : index
    %12 = vector.load %arg12[%c0_13, %c1] : memref<28x18xf32, #tpu.memory_space<vmem>>, vector<28x16xf32>
    %c1_14 = arith.constant 1 : index
    %c0_15 = arith.constant 0 : index
    %c0_16 = arith.constant 0 : index
    %13 = vector.load %arg3[%c1_14, %c0_15, %c0_16] : memref<3x28x28xf32, #tpu.memory_space<vmem>>, vector<1x28x28xf32>
    %14 = vector.shape_cast %13 : vector<1x28x28xf32> to vector<28x28xf32>
    %cst_17 = arith.constant dense<0.000000e+00> : vector<28x16xf32>
    %15 = tpu.matmul %14, %12, %cst_17 {dimension_numbers = #tpu.dot_dimension_numbers<[1], [0], [0], [1], [0, 0, 1, 1], [], []>} : vector<28x28xf32>, vector<28x16xf32>, vector<28x16xf32> -> vector<28x16xf32>
    %16 = arith.addf %11, %15 : vector<28x16xf32>
    %c0_18 = arith.constant 0 : index
    %c2_19 = arith.constant 2 : index
    %17 = vector.load %arg12[%c0_18, %c2_19] : memref<28x18xf32, #tpu.memory_space<vmem>>, vector<28x16xf32>
    %c2_20 = arith.constant 2 : index
    %c0_21 = arith.constant 0 : index
    %c0_22 = arith.constant 0 : index
    %18 = vector.load %arg3[%c2_20, %c0_21, %c0_22] : memref<3x28x28xf32, #tpu.memory_space<vmem>>, vector<1x28x28xf32>
    %19 = vector.shape_cast %18 : vector<1x28x28xf32> to vector<28x28xf32>
    %cst_23 = arith.constant dense<0.000000e+00> : vector<28x16xf32>
    %20 = tpu.matmul %19, %17, %cst_23 {dimension_numbers = #tpu.dot_dimension_numbers<[1], [0], [0], [1], [0, 0, 1, 1], [], []>} : vector<28x28xf32>, vector<28x16xf32>, vector<28x16xf32> -> vector<28x16xf32>
    %21 = arith.addf %16, %20 : vector<28x16xf32>
    %cst_24 = arith.constant 0.000000e+00 : f32
    %22 = vector.broadcast %cst_24 : f32 to vector<28x16xf32>
    %23 = arith.maximumf %21, %22 : vector<28x16xf32>
    %cst_25 = arith.constant 0.000000e+00 : f32
    %24 = vector.broadcast %cst_25 : f32 to vector<28x4xf32>
    %c0_26 = arith.constant 0 : index
    %c0_27 = arith.constant 0 : index
    %25 = vector.load %arg13[%c0_26, %c0_27] : memref<28x20xf32, #tpu.memory_space<vmem>>, vector<28x4xf32>
    tpu.vector_store %arg13[%c0_26, %c0_27], %24 {strides = array<i32>} : memref<28x20xf32, #tpu.memory_space<vmem>>, vector<28x4xf32>,
    %c0_28 = arith.constant 0 : index
    %c4 = arith.constant 4 : index
    %26 = vector.load %arg13[%c0_28, %c4] : memref<28x20xf32, #tpu.memory_space<vmem>>, vector<28x16xf32>
    tpu.vector_store %arg13[%c0_28, %c4], %23 {strides = array<i32>} : memref<28x20xf32, #tpu.memory_space<vmem>>, vector<28x16xf32>,
    %c0_29 = arith.constant 0 : index
    %c0_30 = arith.constant 0 : index
    %27 = vector.load %arg6[%c0_29, %c0_30] : memref<16x1xf32, #tpu.memory_space<vmem>>, vector<16x1xf32>
    %c0_31 = arith.constant 0 : index
    %c0_32 = arith.constant 0 : index
    %28 = vector.load %arg13[%c0_31, %c0_32] : memref<28x20xf32, #tpu.memory_space<vmem>>, vector<28x16xf32>
    %c0_33 = arith.constant 0 : index
    %c0_34 = arith.constant 0 : index
    %c0_35 = arith.constant 0 : index
    %29 = vector.load %arg5[%c0_33, %c0_34, %c0_35] : memref<3x16x28xf32, #tpu.memory_space<vmem>>, vector<1x16x28xf32>
    %30 = vector.shape_cast %29 : vector<1x16x28xf32> to vector<16x28xf32>
    %cst_36 = arith.constant dense<0.000000e+00> : vector<16x16xf32>
    %31 = tpu.matmul %30, %28, %cst_36 {dimension_numbers = #tpu.dot_dimension_numbers<[1], [0], [0], [1], [0, 0, 1, 1], [], []>} : vector<16x28xf32>, vector<28x16xf32>, vector<16x16xf32> -> vector<16x16xf32>
    %32 = vector.broadcast %27 : vector<16x1xf32> to vector<16x16xf32>
    %33 = arith.addf %32, %31 : vector<16x16xf32>
    %c0_37 = arith.constant 0 : index
    %c2_38 = arith.constant 2 : index
    %34 = vector.load %arg13[%c0_37, %c2_38] : memref<28x20xf32, #tpu.memory_space<vmem>>, vector<28x16xf32>
    %c1_39 = arith.constant 1 : index
    %c0_40 = arith.constant 0 : index
    %c0_41 = arith.constant 0 : index
    %35 = vector.load %arg5[%c1_39, %c0_40, %c0_41] : memref<3x16x28xf32, #tpu.memory_space<vmem>>, vector<1x16x28xf32>
    %36 = vector.shape_cast %35 : vector<1x16x28xf32> to vector<16x28xf32>
    %cst_42 = arith.constant dense<0.000000e+00> : vector<16x16xf32>
    %37 = tpu.matmul %36, %34, %cst_42 {dimension_numbers = #tpu.dot_dimension_numbers<[1], [0], [0], [1], [0, 0, 1, 1], [], []>} : vector<16x28xf32>, vector<28x16xf32>, vector<16x16xf32> -> vector<16x16xf32>
    %38 = arith.addf %33, %37 : vector<16x16xf32>
    %c0_43 = arith.constant 0 : index
    %c4_44 = arith.constant 4 : index
    %39 = vector.load %arg13[%c0_43, %c4_44] : memref<28x20xf32, #tpu.memory_space<vmem>>, vector<28x16xf32>
    %c2_45 = arith.constant 2 : index
    %c0_46 = arith.constant 0 : index
    %c0_47 = arith.constant 0 : index
    %40 = vector.load %arg5[%c2_45, %c0_46, %c0_47] : memref<3x16x28xf32, #tpu.memory_space<vmem>>, vector<1x16x28xf32>
    %41 = vector.shape_cast %40 : vector<1x16x28xf32> to vector<16x28xf32>
    %cst_48 = arith.constant dense<0.000000e+00> : vector<16x16xf32>
    %42 = tpu.matmul %41, %39, %cst_48 {dimension_numbers = #tpu.dot_dimension_numbers<[1], [0], [0], [1], [0, 0, 1, 1], [], []>} : vector<16x28xf32>, vector<28x16xf32>, vector<16x16xf32> -> vector<16x16xf32>
    %43 = arith.addf %38, %42 : vector<16x16xf32>
    %cst_49 = arith.constant 0.000000e+00 : f32
    %44 = vector.broadcast %cst_49 : f32 to vector<16x16xf32>
    %45 = arith.maximumf %43, %44 : vector<16x16xf32>
    %cst_50 = arith.constant 0.000000e+00 : f32
    %46 = vector.broadcast %cst_50 : f32 to vector<16x8xf32>
    %c0_51 = arith.constant 0 : index
    %c0_52 = arith.constant 0 : index
    %47 = vector.load %arg14[%c0_51, %c0_52] : memref<16x24xf32, #tpu.memory_space<vmem>>, vector<16x8xf32>
    tpu.vector_store %arg14[%c0_51, %c0_52], %46 {strides = array<i32>} : memref<16x24xf32, #tpu.memory_space<vmem>>, vector<16x8xf32>,
    %c0_53 = arith.constant 0 : index
    %c8 = arith.constant 8 : index
    %48 = vector.load %arg14[%c0_53, %c8] : memref<16x24xf32, #tpu.memory_space<vmem>>, vector<16x16xf32>
    tpu.vector_store %arg14[%c0_53, %c8], %45 {strides = array<i32>} : memref<16x24xf32, #tpu.memory_space<vmem>>, vector<16x16xf32>,
    %c0_54 = arith.constant 0 : index
    %c0_55 = arith.constant 0 : index
    %49 = vector.load %arg8[%c0_54, %c0_55] : memref<8x1xf32, #tpu.memory_space<vmem>>, vector<8x1xf32>
    %c0_56 = arith.constant 0 : index
    %c0_57 = arith.constant 0 : index
    %50 = vector.load %arg14[%c0_56, %c0_57] : memref<16x24xf32, #tpu.memory_space<vmem>>, vector<16x16xf32>
    %c0_58 = arith.constant 0 : index
    %c0_59 = arith.constant 0 : index
    %c0_60 = arith.constant 0 : index
    %51 = vector.load %arg7[%c0_58, %c0_59, %c0_60] : memref<3x8x16xf32, #tpu.memory_space<vmem>>, vector<1x8x16xf32>
    %52 = vector.shape_cast %51 : vector<1x8x16xf32> to vector<8x16xf32>
    %cst_61 = arith.constant dense<0.000000e+00> : vector<8x16xf32>
    %53 = tpu.matmul %52, %50, %cst_61 {dimension_numbers = #tpu.dot_dimension_numbers<[1], [0], [0], [1], [0, 0, 1, 1], [], []>} : vector<8x16xf32>, vector<16x16xf32>, vector<8x16xf32> -> vector<8x16xf32>
    %54 = vector.broadcast %49 : vector<8x1xf32> to vector<8x16xf32>
    %55 = arith.addf %54, %53 : vector<8x16xf32>
    %c0_62 = arith.constant 0 : index
    %c4_63 = arith.constant 4 : index
    %56 = vector.load %arg14[%c0_62, %c4_63] : memref<16x24xf32, #tpu.memory_space<vmem>>, vector<16x16xf32>
    %c1_64 = arith.constant 1 : index
    %c0_65 = arith.constant 0 : index
    %c0_66 = arith.constant 0 : index
    %57 = vector.load %arg7[%c1_64, %c0_65, %c0_66] : memref<3x8x16xf32, #tpu.memory_space<vmem>>, vector<1x8x16xf32>
    %58 = vector.shape_cast %57 : vector<1x8x16xf32> to vector<8x16xf32>
    %cst_67 = arith.constant dense<0.000000e+00> : vector<8x16xf32>
    %59 = tpu.matmul %58, %56, %cst_67 {dimension_numbers = #tpu.dot_dimension_numbers<[1], [0], [0], [1], [0, 0, 1, 1], [], []>} : vector<8x16xf32>, vector<16x16xf32>, vector<8x16xf32> -> vector<8x16xf32>
    %60 = arith.addf %55, %59 : vector<8x16xf32>
    %c0_68 = arith.constant 0 : index
    %c8_69 = arith.constant 8 : index
    %61 = vector.load %arg14[%c0_68, %c8_69] : memref<16x24xf32, #tpu.memory_space<vmem>>, vector<16x16xf32>
    %c2_70 = arith.constant 2 : index
    %c0_71 = arith.constant 0 : index
    %c0_72 = arith.constant 0 : index
    %62 = vector.load %arg7[%c2_70, %c0_71, %c0_72] : memref<3x8x16xf32, #tpu.memory_space<vmem>>, vector<1x8x16xf32>
    %63 = vector.shape_cast %62 : vector<1x8x16xf32> to vector<8x16xf32>
    %cst_73 = arith.constant dense<0.000000e+00> : vector<8x16xf32>
    %64 = tpu.matmul %63, %61, %cst_73 {dimension_numbers = #tpu.dot_dimension_numbers<[1], [0], [0], [1], [0, 0, 1, 1], [], []>} : vector<8x16xf32>, vector<16x16xf32>, vector<8x16xf32> -> vector<8x16xf32>
    %65 = arith.addf %60, %64 : vector<8x16xf32>
    %cst_74 = arith.constant 0.000000e+00 : f32
    %66 = vector.broadcast %cst_74 : f32 to vector<8x16xf32>
    %67 = arith.maximumf %65, %66 : vector<8x16xf32>
    %c0_75 = arith.constant 0 : index
    %c0_76 = arith.constant 0 : index
    %68 = vector.load %arg9[%c0_75, %c0_76] : memref<28x8xf32, #tpu.memory_space<vmem>>, vector<28x8xf32>
    %cst_77 = arith.constant dense<0.000000e+00> : vector<28x16xf32>
    %69 = tpu.matmul %68, %67, %cst_77 {dimension_numbers = #tpu.dot_dimension_numbers<[1], [0], [0], [1], [0, 0, 1, 1], [], []>} : vector<28x8xf32>, vector<8x16xf32>, vector<28x16xf32> -> vector<28x16xf32>
    %c0_78 = arith.constant 0 : index
    %c0_79 = arith.constant 0 : index
    %70 = vector.load %arg10[%c0_78, %c0_79] : memref<28x1xf32, #tpu.memory_space<vmem>>, vector<28x1xf32>
    %71 = vector.broadcast %70 : vector<28x1xf32> to vector<28x16xf32>
    %72 = arith.addf %69, %71 : vector<28x16xf32>
    %c0_80 = arith.constant 0 : index
    %c0_81 = arith.constant 0 : index
    %c0_82 = arith.constant 0 : index
    %73 = vector.load %arg2[%c0_80, %c0_81, %c0_82] : memref<1x28x1xf32, #tpu.memory_space<vmem>>, vector<1x28x1xf32>
    %74 = vector.shape_cast %73 : vector<1x28x1xf32> to vector<28x1xf32>
    %c0_83 = arith.constant 0 : index
    %c0_84 = arith.constant 0 : index
    %c0_85 = arith.constant 0 : index
    %75 = vector.load %arg11[%c0_83, %c0_84, %c0_85] : memref<1x28x17xf32, #tpu.memory_space<vmem>>, vector<1x28x1xf32>
    %76 = vector.shape_cast %75 : vector<1x28x1xf32> to vector<28x1xf32>
    %77 = vector.shape_cast %74 : vector<28x1xf32> to vector<1x28x1xf32>
    tpu.vector_store %arg11[%c0_83, %c0_84, %c0_85], %77 {strides = array<i32>} : memref<1x28x17xf32, #tpu.memory_space<vmem>>, vector<1x28x1xf32>,
    %c0_86 = arith.constant 0 : index
    %c0_87 = arith.constant 0 : index
    %c1_88 = arith.constant 1 : index
    %78 = vector.load %arg11[%c0_86, %c0_87, %c1_88] : memref<1x28x17xf32, #tpu.memory_space<vmem>>, vector<1x28x16xf32>
    %79 = vector.shape_cast %78 : vector<1x28x16xf32> to vector<28x16xf32>
    %80 = vector.shape_cast %72 : vector<28x16xf32> to vector<1x28x16xf32>
    tpu.vector_store %arg11[%c0_86, %c0_87, %c1_88], %80 {strides = array<i32>} : memref<1x28x17xf32, #tpu.memory_space<vmem>>, vector<1x28x16xf32>,
    return
  }
  func.func @transform_0(%arg0: i32) -> (i32, i32, i32) {
    %c0_i32 = arith.constant 0 : i32
    %c0_i32_0 = arith.constant 0 : i32
    %c0_i32_1 = arith.constant 0 : i32
    return %arg0, %c0_i32, %c0_i32_0 : i32, i32, i32
  }
  func.func @transform_1(%arg0: i32) -> (i32, i32, i32) {
    %c0_i32 = arith.constant 0 : i32
    %c0_i32_0 = arith.constant 0 : i32
    %c0_i32_1 = arith.constant 0 : i32
    return %arg0, %c0_i32, %c0_i32_0 : i32, i32, i32
  }
  func.func @transform_2(%arg0: i32) -> (i32, i32, i32) {
    %c0_i32 = arith.constant 0 : i32
    %c0_i32_0 = arith.constant 0 : i32
    %c0_i32_1 = arith.constant 0 : i32
    %c0_i32_2 = arith.constant 0 : i32
    return %c0_i32, %c0_i32_0, %c0_i32_1 : i32, i32, i32
  }
  func.func @transform_3(%arg0: i32) -> (i32, i32) {
    %c0_i32 = arith.constant 0 : i32
    %c0_i32_0 = arith.constant 0 : i32
    %c0_i32_1 = arith.constant 0 : i32
    return %c0_i32, %c0_i32_0 : i32, i32
  }
  func.func @transform_4(%arg0: i32) -> (i32, i32, i32) {
    %c0_i32 = arith.constant 0 : i32
    %c0_i32_0 = arith.constant 0 : i32
    %c0_i32_1 = arith.constant 0 : i32
    %c0_i32_2 = arith.constant 0 : i32
    return %c0_i32, %c0_i32_0, %c0_i32_1 : i32, i32, i32
  }
  func.func @transform_5(%arg0: i32) -> (i32, i32) {
    %c0_i32 = arith.constant 0 : i32
    %c0_i32_0 = arith.constant 0 : i32
    %c0_i32_1 = arith.constant 0 : i32
    return %c0_i32, %c0_i32_0 : i32, i32
  }
  func.func @transform_6(%arg0: i32) -> (i32, i32, i32) {
    %c0_i32 = arith.constant 0 : i32
    %c0_i32_0 = arith.constant 0 : i32
    %c0_i32_1 = arith.constant 0 : i32
    %c0_i32_2 = arith.constant 0 : i32
    return %c0_i32, %c0_i32_0, %c0_i32_1 : i32, i32, i32
  }
  func.func @transform_7(%arg0: i32) -> (i32, i32) {
    %c0_i32 = arith.constant 0 : i32
    %c0_i32_0 = arith.constant 0 : i32
    %c0_i32_1 = arith.constant 0 : i32
    return %c0_i32, %c0_i32_0 : i32, i32
  }
  func.func @transform_8(%arg0: i32) -> (i32, i32) {
    %c0_i32 = arith.constant 0 : i32
    %c0_i32_0 = arith.constant 0 : i32
    %c0_i32_1 = arith.constant 0 : i32
    return %c0_i32, %c0_i32_0 : i32, i32
  }
  func.func @transform_9(%arg0: i32) -> (i32, i32) {
    %c0_i32 = arith.constant 0 : i32
    %c0_i32_0 = arith.constant 0 : i32
    %c0_i32_1 = arith.constant 0 : i32
    return %c0_i32, %c0_i32_0 : i32, i32
  }
  func.func @transform_10(%arg0: i32) -> (i32, i32, i32) {
    %c0_i32 = arith.constant 0 : i32
    %c0_i32_0 = arith.constant 0 : i32
    %c0_i32_1 = arith.constant 0 : i32
    return %arg0, %c0_i32, %c0_i32_0 : i32, i32, i32
  }
}

</mosaic_0001>

<bundles_post_ra>
// kernel: tpu_custom_call.1
= control target key start
LH: loop header
LB: loop body
LE: loop exit
PB: predicated region body
PF: predicated region fallthrough
CT: control target
= control target key end

     0   :  { %s2081_s13 = smov 0   ;;  %s2302_s0 = inlined_call_operand.vmem [shape: f32[2,28,16], index: 0, kind: input, shape index: {}]   ;;  %s2303_s1 = inlined_call_operand.vmem [shape: f32[2,28,1], index: 1, kind: input, shape index: {}]   ;;  %s2304_s2 = inlined_call_operand.vmem [shape: f32[3,28,28], index: 2, kind: input, shape index: {}]   ;;  %s2305_s3 = inlined_call_operand.vmem [shape: f32[28,1], index: 3, kind: input, shape index: {}]   ;;  %s2306_s4 = inlined_call_operand.vmem [shape: f32[3,16,28], index: 4, kind: input, shape index: {}]   ;;  %s2307_s5 = inlined_call_operand.vmem [shape: f32[16,1], index: 5, kind: input, shape index: {}]   ;;  %s2308_s6 = inlined_call_operand.vmem [shape: f32[3,8,16], index: 6, kind: input, shape index: {}]   ;;  %s2309_s7 = inlined_call_operand.vmem [shape: f32[8,1], index: 7, kind: input, shape index: {}]   ;;  %s2310_s8 = inlined_call_operand.vmem [shape: f32[28,8], index: 8, kind: input, shape index: {}]   ;;  %s2311_s9 = inlined_call_operand.vmem [shape: f32[28,1], index: 9, kind: input, shape index: {}]   ;;  %s2312_s10 = inlined_call_operand.vmem [shape: f32[2,28,17], index: 10, kind: output, shape index: {}]  }
   0x1 LB: > { %s1619_s14 = sadd.s32 4294967295, %s2011_s13   ;;  %p1623_p0 = scmp.ge.s32.totalorder %s2011_s13, 1  ;;  %s2011_s13 = sphi %s2081_s13, %s20_s13  }
   0x2   : > { %p322_p1 = scmp.lt.s32.totalorder %s2011_s13, 3 }
   0x4   : > { %p323_p2 = pnand %p1623_p0, %p322_p1 }
   0x5   : > { %p365_p3 = scmp.lt.s32.totalorder (!%p323_p2), %s1619_s14, 1  ;;  %vm380_vm0 = vcmask (!%p323_p2), 15360   ;;  %vm384_vm1 = vcmask (!%p323_p2), 11264   ;;  %v2013_v0 = vmov (!%p323_p2), 0.0   ;;  %s2014_s19 = smov (!%p323_p2), 2   ;;  %vm406_vm2 = vcmask (!%p323_p2), 146448  }
   0x6   : > { %326 = sbr.rel (%p323_p2) target bundleno = 1784 (0x6f8), region = 60  ;;  %383 = vst.msk [vmem:[#allocation2 + $0x10] sm:$0xff] (!%p323_p2), %vm380_vm0, %v2013_v0  ;;  %381 = vst.msk [vmem:[#allocation2] sm:$0xff] (!%p323_p2), %vm380_vm0, %v2013_v0  ;;  %vm410_vm3 = vcmask (!%p323_p2), 142352   ;;  %v420_v9 = vld [vmem:[%s2304_s2] sm:$0xff] (!%p323_p2)  ;;  %vm424_vm4 = vcmask (!%p323_p2), 228352  }
   0x7   : > { %382 = vst.msk [vmem:[#allocation2 + $0x8] sm:$0xff] (!%p323_p2), %vm380_vm0, %v2013_v0  ;;  %1744 = vmatprep.mubr.msk.f32.mxu0 (!%p323_p2), %vm424_vm4, %v420_v9  ;;  %vm437_vm5 = vcmask (!%p323_p2), 1043456   ;;  %s2015_s22 = smov (!%p323_p2), 127   ;;  %vm2016_vm6 = vmmov (!%p323_p2), 1   ;;  %s2017_s23 = smov (!%p323_p2), 126   ;;  %v421_v19 = vld [vmem:[%s2304_s2 + $0x8] sm:$0xff] (!%p323_p2) }
   0x8   : > { %385 = vst.msk [vmem:[#allocation2 + $0x18] sm:$0xf] (!%p323_p2), %vm384_vm1, %v2013_v0  ;;  %vm2103_vm7 = vmpackc.low (!%p323_p2), %vm437_vm5, %vm2016_vm6  ;;  %v422_v20 = vld [vmem:[%s2304_s2 + $0x10] sm:$0xff] (!%p323_p2)  ;;  %v423_v21 = vld [vmem:[%s2304_s2 + $0x18] sm:$0xf] (!%p323_p2)  ;;  %v2018_v25 = vmov (!%p323_p2), 0  }
   0x9   : > { %v1635_v22 = vld [vmem:[%s2304_s2 + $0x20] sm:$0xff] (!%p323_p2)  ;;  %v413_v23 = vld [vmem:[%s2305_s3 + $0x8] sm:$0xff] (!%p323_p2)  ;;  %1974 = vset.pattern.permute.xlu1 (!%p323_p2), %v2018_v25  ;;  %1973 = vset.pattern.permute.xlu0 (!%p323_p2), %v2018_v25  ;;  %v414_v26 = vld [vmem:[%s2305_s3 + $0x10] sm:$0xff] (!%p323_p2)  ;;  %vm795_vm8 = vcmask (!%p323_p2), 31744   ;;  %vm799_vm9 = vcmask (!%p323_p2), 27648   ;;  %vm817_vm10 = vcmask (!%p323_p2), 162848  }
   0xa   : > { %v412_v24 = vld [vmem:[%s2305_s3] sm:$0xff] (!%p323_p2)  ;;  %v415_v27 = vld [vmem:[%s2305_s3 + $0x18] sm:$0xf] (!%p323_p2)  ;;  %v1636_v43 = vld [vmem:[%s2304_s2 + $0x28] sm:$0xff] (!%p323_p2)  ;;  %797 = vst.msk [vmem:[#allocation3 + $0x8] sm:$0xff] (!%p323_p2), %vm795_vm8, %v2013_v0  ;;  %vm821_vm11 = vcmask (!%p323_p2), 158752  }
   0xb   : > { %v1637_v44 = vld [vmem:[%s2304_s2 + $0x30] sm:$0xff] (!%p323_p2)  ;;  %v1638_v46 = vld [vmem:[%s2304_s2 + $0x38] sm:$0xf] (!%p323_p2)  ;;  %v1644_v47 = vld [vmem:[%s2304_s2 + $0x40] sm:$0xff] (!%p323_p2)  ;;  %796 = vst.msk [vmem:[#allocation3] sm:$0xff] (!%p323_p2), %vm795_vm8, %v2013_v0  ;;  %vm1130_vm12 = vcmask (!%p323_p2), 64512  }
   0xc   : > { %v1645_v48 = vld [vmem:[%s2304_s2 + $0x48] sm:$0xff] (!%p323_p2)  ;;  %v1646_v49 = vld [vmem:[%s2304_s2 + $0x50] sm:$0xff] (!%p323_p2)  ;;  %v1647_v50 = vld [vmem:[%s2304_s2 + $0x58] sm:$0xf] (!%p323_p2)  ;;  %798 = vst.msk [vmem:[#allocation3 + $0x10] sm:$0xff] (!%p323_p2), %vm795_vm8, %v2013_v0  ;;  %vm2023_vm13 = vmmov (!%p323_p2), 0  }
   0xd   : > { %s2316_s14 = smov (!%p365_p3, %s1619_s14), 1  ;;  %800 = vst.msk [vmem:[#allocation3 + $0x18] sm:$0xf] %vm799_vm9, %v2013_v0  ;;  %vm1141_vm14 = vcmask 195648   ;;  %s2024_s20 = smov 120   ;;  %vm1148_vm15 = vcmask 130048  }
   0xe   : > { %s2093_s15 = sshll.u32 %s2316_s14, 5  ;;  %1132 = vst.msk [vmem:[#allocation4 + $0x8] sm:$0xff] %vm1130_vm12, %v2013_v0  ;;  %1131 = vst.msk [vmem:[#allocation4] sm:$0xff] %vm1130_vm12, %v2013_v0  ;;  %vm1524_vm0 = vcmask 7168   ;;  %vm1528_vm1 = vcmask 3072  }
   0xf   : > { %s369_s18 = scalar_lea.vmem %s2302_s0, %s2093_s15  ;;  %s2289_s12 = scalar_lea.vmem %s2312_s10, %s2093_s15 }
  0x10   : > { %v388_v1 = vld [vmem:[%s369_s18 + $0x10] sm:$0xff]  ;;  %v386_v2 = vld [vmem:[%s369_s18] sm:$0xff]  ;;  %v389_v3 = vld [vmem:[%s369_s18 + $0x18] sm:$0xf] }
  0x11   : > { %398 = vrot.lane.b32.xlu1 %v388_v1, %s2014_s19  ;;  %394 = vrot.lane.b32.xlu0 %v386_v2, %s2014_s19  ;;  %v387_v4 = vld [vmem:[%s369_s18 + $0x8] sm:$0xff] }
  0x15   : > { %400 = vrot.lane.b32.xlu1 %v389_v3, %s2014_s19  ;;  %396 = vrot.lane.b32.xlu0 %v387_v4, %s2014_s19  ;;  %s2019_s19 = smov 4  }
  0x83   : > { %v399_v5 = vpop.permute.xlu1 %398  ;;  %v395_v6 = vpop.permute.xlu0 %394 }
  0x84   : > { %409 = vst.msk [vmem:[#allocation2 + $0x10] sm:$0xff] %vm406_vm2, %v399_v5  ;;  %407 = vst.msk [vmem:[#allocation2] sm:$0xff] %vm406_vm2, %v395_v6  ;;  %v829_v6 = vld [vmem:[%s2306_s4] sm:$0xff] }
  0x85   : > { %1786 = vmatprep.mubr.msk.f32.mxu1 %vm424_vm4, %v829_v6 }
  0x87   : > { %v401_v7 = vpop.permute.xlu1 %400  ;;  %v397_v8 = vpop.permute.xlu0 %396 }
  0x88   : > { %411 = vst.msk [vmem:[#allocation2 + $0x18] sm:$0xf] %vm410_vm3, %v401_v7  ;;  %vm1550_vm3 = vcmask 134152  }
  0x89   : > { %408 = vst.msk [vmem:[#allocation2 + $0x8] sm:$0xff] %vm406_vm2, %v397_v8  ;;  %vm1546_vm2 = vcmask 138248  }
  0x8b   : > { %v418_v10 = vld [vmem:[#allocation2 + $0x10] sm:$0xff]  ;;  %v416_v12 = vld [vmem:[#allocation2] sm:$0xff] }
  0x8f   : > { %v419_v11 = vld [vmem:[#allocation2 + $0x18] sm:$0xf] }
  0x90   : > { %v417_v13 = vld [vmem:[#allocation2 + $0x8] sm:$0xff]  ;;  %v1958_v14 = vpack.i.bf16 %v419_v11, %v418_v10  ;;  %v1844_v18 = vpack.c.bf16 %v419_v11, %v418_v10 }
  0x91   : > { %v1953_v15 = vpack.i.bf16 %v417_v13, %v416_v12  ;;  %v1840_v16 = vpack.c.bf16 %v417_v13, %v416_v12 }
  0x92   : > { %1959 = vrot.lane.b32.xlu1 %v1958_v14, %s2015_s22 }
  0x93   : > { %1954 = vrot.lane.b32.xlu0 %v1953_v15, %s2015_s22  ;;  %1841 = vmatprep.subr.bf16.mxu0 %v1840_v16  ;;  %s2020_s22 = smov 124  }
  0x94   : > { %1843 = vmatpush3.bf16.msra.mxu0 %v1840_v16 }
  0x95   : > { %1846 = vmatprep.subr.msk.bf16.mxu0 %vm2103_vm7, %v1844_v18 }
  0x96   : > { %1969 = vrot.lane.b32.xlu1 %v1958_v14, %s2017_s23 }
  0x97   : > { %1964 = vrot.lane.b32.xlu0 %v1953_v15, %s2017_s23 }
  0x98   : > { %1849 = vmatpush3.bf16.msk.msra.mxu0 %vm2103_vm7, %v1844_v18  ;;  %v823_v18 = vld [vmem:[%s2307_s5] sm:$0xff] }
  0x9a   : > { %533 = vperm.xlu1 %1974, %v413_v23  }
  0x9b   : > { %1745 = vmatmul.mubr.msk.f32.vlgmr.msra.gmra.mrb[0].mxu0 %vm424_vm4, %v421_v19  ;;  %528 = vperm.xlu0 %1973, %v412_v24   ;;  %v830_v19 = vld [vmem:[%s2306_s4 + $0x8] sm:$0xff] }
  0x9c   : > { %1747 = vmatprep.mubr.msk.f32.mxu0 %vm424_vm4, %v422_v20  ;;  %v1656_v20 = vld [vmem:[%s2306_s4 + $0x10] sm:$0xff] }
  0x9e   : > { %538 = vperm.xlu1 %1974, %v414_v26  }
  0x9f   : > { %1748 = vmatmul.mubr.msk.f32.gmra.mrb[2].mxu0 %vm424_vm4, %v423_v21  ;;  %543 = vperm.xlu0 %1973, %v415_v27   ;;  %v824_v21 = vld [vmem:[%s2307_s5 + $0x8] sm:$0xff] }
  0xa0   : > { %1758 = vmatprep.mubr.msk.f32.mxu0 %vm424_vm4, %v1635_v22 }
 0x104   : > { %v1960_v28 = vpop.permute.xlu1 %1959 }
 0x105   : > { %v1955_v29 = vpop.permute.xlu0 %1954  ;;  %v1962_v30 = vunpack.i.h.bf16 %v1960_v28  ;;  %v1961_v31 = vunpack.i.l.bf16 %v1960_v28 }
 0x106   : > { %v1957_v32 = vunpack.i.h.bf16 %v1955_v29  ;;  %v1956_v33 = vunpack.i.l.bf16 %v1955_v29 }
 0x107   : > { %v1854_v36 = vpack.c.bf16 %v1962_v30, %v1961_v31 }
 0x108   : > { %v1850_v34 = vpack.c.bf16 %v1957_v32, %v1956_v33  ;;  %v1970_v39 = vpop.permute.xlu1 %1969 }
 0x109   : > { %v1965_v35 = vpop.permute.xlu0 %1964  ;;  %v1972_v40 = vunpack.i.h.bf16 %v1970_v39  ;;  %v1971_v41 = vunpack.i.l.bf16 %v1970_v39 }
 0x10a   : > { %v1967_v37 = vunpack.i.h.bf16 %v1965_v35  ;;  %v1966_v38 = vunpack.i.l.bf16 %v1965_v35  ;;  %1851 = vmatprep.subr.bf16.mxu0 %v1850_v34 }
 0x10b   : > { %1853 = vmatpush3.bf16.msra.mxu0 %v1850_v34  ;;  %v1864_v45 = vpack.c.bf16 %v1972_v40, %v1971_v41  ;;  %v1662_v40 = vld [vmem:[%s2306_s4 + $0x28] sm:$0xff]  ;;  %v2021_v41 = vmov 0.0|0.0  }
 0x10c   : > { %1856 = vmatprep.subr.msk.bf16.mxu0 %vm2103_vm7, %v1854_v36  ;;  %v1860_v42 = vpack.c.bf16 %v1967_v37, %v1966_v38  ;;  %v1657_v37 = vld [vmem:[%s2306_s4 + $0x18] sm:$0xff]  ;;  %v1661_v38 = vld [vmem:[%s2306_s4 + $0x20] sm:$0xff] }
 0x10f   : > { %1859 = vmatpush3.bf16.msk.msra.mxu0 %vm2103_vm7, %v1854_v36 }
 0x110   : > { %1861 = vmatprep.subr.bf16.mxu0 %v1860_v42 }
 0x112   : > { %1759 = vmatmul.mubr.msk.f32.vlgmr.msra.gmra.mrb[0].mxu0 %vm424_vm4, %v1636_v43 }
 0x113   : > { %1863 = vmatpush3.bf16.msra.mxu0 %v1860_v42  ;;  %1761 = vmatprep.mubr.msk.f32.mxu0 %vm424_vm4, %v1637_v44 }
 0x114   : > { %1866 = vmatprep.subr.msk.bf16.mxu0 %vm2103_vm7, %v1864_v45 }
 0x116   : > { %1762 = vmatmul.mubr.msk.f32.gmra.mrb[2].mxu0 %vm424_vm4, %v1638_v46 }
 0x117   : > { %1869 = vmatpush3.bf16.msk.msra.mxu0 %vm2103_vm7, %v1864_v45  ;;  %1772 = vmatprep.mubr.msk.f32.mxu0 %vm424_vm4, %v1644_v47 }
 0x119   : > { %v534_v52 = vpop.permute.xlu1 %533 }
 0x11a   : > { %1773 = vmatmul.mubr.msk.f32.vlgmr.msra.gmra.mrb[0].mxu0 %vm424_vm4, %v1645_v48  ;;  %v529_v51 = vpop.permute.xlu0 %528 }
 0x11b   : > { %1775 = vmatprep.mubr.msk.f32.mxu0 %vm424_vm4, %v1646_v49 }
 0x11d   : > { %v539_v61 = vpop.permute.xlu1 %538 }
 0x11e   : > { %1776 = vmatmul.mubr.msk.f32.gmra.mrb[2].mxu0 %vm424_vm4, %v1647_v50  ;;  %v544_v58 = vpop.permute.xlu0 %543 }
 0x1ed   : > { %v1774_v53 = vpop.f32.mrb[0].mxu0 }
 0x1ee   : > { %v1909_v54 = vadd.f32 %v1774_v53, %v534_v52  ;;  %v768_v55 = vpop.f32.mrb[1].mxu0 }
 0x1ef   : > { %v1910_v56 = vadd.f32 %v768_v55, %v529_v51  ;;  %v1399_v55 = vld [vmem:[%s2311_s9] sm:$0xff] }
 0x1f0   : > { %v792_v57 = vmax.f32 %v1909_v54, 0.0 }
 0x1f1   : > { %v791_v59 = vmax.f32 %v1910_v56, 0.0  ;;  %v1777_v60 = vpop.f32.mrb[2].mxu0  ;;  %v1144_v56 = vld [vmem:[%s2309_s7] sm:$0xff] }
 0x1f2   : > { %v1911_v62 = vadd.f32 %v1777_v60, %v544_v58  ;;  %807 = vrot.lane.b32.xlu0 %v792_v57, %s2019_s19  ;;  %v778_v63 = vpop.f32.mrb[3].mxu0  ;;  %v1147_v57 = vld [vmem:[%s2308_s6] sm:$0xff]  ;;  %v1401_v58 = vld [vmem:[%s2311_s9 + $0x10] sm:$0xff]  ;;  %v1402_v60 = vld [vmem:[%s2311_s9 + $0x18] sm:$0xf] }
 0x1f3   : > { %v1912_v1 = vadd.f32 %v778_v63, %v539_v61  ;;  %805 = vrot.lane.b32.xlu1 %v791_v59, %s2019_s19  ;;  %v1400_v59 = vld [vmem:[%s2311_s9 + $0x8] sm:$0xff] }
 0x1f4   : > { %v794_v2 = vmax.f32 %v1911_v62, 0.0 }
 0x1f5   : > { %v793_v3 = vmax.f32 %v1912_v1, 0.0 }
 0x1f6   : > { %811 = vrot.lane.b32.xlu0 %v794_v2, %s2019_s19 }
 0x1f7   : > { %809 = vrot.lane.b32.xlu1 %v793_v3, %s2019_s19  ;;  %s2022_s19 = smov 8  }
 0x264   : > { %v808_v4 = vpop.permute.xlu0 %807 }
 0x265   : > { %819 = vst.msk [vmem:[#allocation3 + $0x8] sm:$0xff] %vm817_vm10, %v808_v4  ;;  %v806_v5 = vpop.permute.xlu1 %805 }
 0x266   : > { %818 = vst.msk [vmem:[#allocation3] sm:$0xff] %vm817_vm10, %v806_v5  ;;  %v1667_v5 = vld [vmem:[%s2308_s6 + $0x8] sm:$0xff] }
 0x268   : > { %v812_v7 = vpop.permute.xlu0 %811 }
 0x269   : > { %822 = vst.msk [vmem:[#allocation3 + $0x18] sm:$0xf] %vm821_vm11, %v812_v7  ;;  %v810_v8 = vpop.permute.xlu1 %809  ;;  %v1669_v7 = vld [vmem:[%s2308_s6 + $0x10] sm:$0xff] }
 0x26a   : > { %820 = vst.msk [vmem:[#allocation3 + $0x10] sm:$0xff] %vm817_vm10, %v810_v8  ;;  %v1395_v8 = vld [vmem:[%s2310_s8] sm:$0xff] }
 0x26b   : > { %1834 = vmatprep.mubr.msk.f32.mxu0 %vm1130_vm12, %v1395_v8 }
 0x26c   : > { %v826_v9 = vld [vmem:[#allocation3 + $0x8] sm:$0xff] }
 0x26d   : > { %v825_v10 = vld [vmem:[#allocation3] sm:$0xff] }
 0x26e   : > { %v1870_v11 = vpack.c.bf16 %v826_v9, %v825_v10  ;;  %v1975_v12 = vpack.i.bf16 %v826_v9, %v825_v10 }
 0x270   : > { %1871 = vmatprep.subr.bf16.mxu1 %v1870_v11  ;;  %1976 = vrot.lane.b32.xlu1 %v1975_v12, %s2017_s23  ;;  %v828_v13 = vld [vmem:[#allocation3 + $0x18] sm:$0xf] }
 0x271   : > { %1873 = vmatpush3.bf16.msra.mxu1 %v1870_v11  ;;  %v827_v14 = vld [vmem:[#allocation3 + $0x10] sm:$0xff] }
 0x272   : > { %v1980_v15 = vpack.i.bf16 %v828_v13, %v827_v14  ;;  %v1874_v16 = vpack.c.bf16 %v828_v13, %v827_v14  ;;  %v1397_v14 = vld [vmem:[%s2310_s8 + $0x10] sm:$0xff] }
 0x274   : > { %1986 = vrot.lane.b32.xlu1 %v1975_v12, %s2020_s22  ;;  %1981 = vrot.lane.b32.xlu0 %v1980_v15, %s2017_s23 }
 0x275   : > { %1876 = vmatprep.subr.msk.bf16.mxu1 %vm2103_vm7, %v1874_v16 }
 0x276   : > { %1879 = vmatpush3.bf16.msk.msra.mxu1 %vm2103_vm7, %v1874_v16 }
 0x278   : > { %917 = vperm.xlu1 %1974, %v823_v18   ;;  %1991 = vrot.lane.b32.xlu0 %v1980_v15, %s2020_s22  ;;  %v1398_v15 = vld [vmem:[%s2310_s8 + $0x18] sm:$0xf] }
 0x279   : > { %1787 = vmatmul.mubr.msk.f32.vlgmr.msra.gmra.mrb[0].mxu1 %vm424_vm4, %v830_v19 }
 0x27a   : > { %1797 = vmatprep.mubr.msk.f32.mxu1 %vm424_vm4, %v1656_v20 }
 0x27c   : > { %922 = vperm.xlu0 %1973, %v824_v21  }
 0x2e2   : > { %v1977_v22 = vpop.permute.xlu1 %1976 }
 0x2e3   : > { %v1979_v23 = vunpack.i.h.bf16 %v1977_v22  ;;  %v1978_v24 = vunpack.i.l.bf16 %v1977_v22 }
 0x2e5   : > { %v1880_v25 = vpack.c.bf16 %v1979_v23, %v1978_v24 }
 0x2e6   : > { %v1982_v26 = vpop.permute.xlu0 %1981  ;;  %v1987_v27 = vpop.permute.xlu1 %1986 }
 0x2e7   : > { %v1984_v28 = vunpack.i.h.bf16 %v1982_v26  ;;  %v1983_v29 = vunpack.i.l.bf16 %v1982_v26  ;;  %v1989_v30 = vunpack.i.h.bf16 %v1987_v27  ;;  %v1988_v31 = vunpack.i.l.bf16 %v1987_v27  ;;  %1881 = vmatprep.subr.bf16.mxu1 %v1880_v25 }
 0x2e8   : > { %1883 = vmatpush3.bf16.msra.mxu1 %v1880_v25 }
 0x2e9   : > { %v1884_v32 = vpack.c.bf16 %v1984_v28, %v1983_v29  ;;  %v1890_v34 = vpack.c.bf16 %v1989_v30, %v1988_v31 }
 0x2ea   : > { %v1992_v33 = vpop.permute.xlu0 %1991 }
 0x2eb   : > { %v1994_v35 = vunpack.i.h.bf16 %v1992_v33  ;;  %v1993_v36 = vunpack.i.l.bf16 %v1992_v33  ;;  %1886 = vmatprep.subr.msk.bf16.mxu1 %vm2103_vm7, %v1884_v32 }
 0x2ec   : > { %1889 = vmatpush3.bf16.msk.msra.mxu1 %vm2103_vm7, %v1884_v32 }
 0x2ed   : > { %1891 = vmatprep.subr.bf16.mxu1 %v1890_v34  ;;  %v1894_v39 = vpack.c.bf16 %v1994_v35, %v1993_v36 }
 0x2ef   : > { %1798 = vmatmul.mubr.msk.f32.vlgmr.msra.gmra.mrb[0].mxu1 %vm424_vm4, %v1657_v37 }
 0x2f0   : > { %1893 = vmatpush3.bf16.msra.mxu1 %v1890_v34  ;;  %1808 = vmatprep.mubr.msk.f32.mxu1 %vm424_vm4, %v1661_v38 }
 0x2f1   : > { %1896 = vmatprep.subr.msk.bf16.mxu1 %vm2103_vm7, %v1894_v39 }
 0x2f4   : > { %1899 = vmatpush3.bf16.msk.msra.mxu1 %vm2103_vm7, %v1894_v39 }
 0x2f5   : > { %1900 = vmatprep.subr.bf16.mxu1 %v2021_v41 }
 0x2f7   : > { %1809 = vmatmul.mubr.msk.f32.vlgmr.msra.gmra.mrb[0].mxu1 %vm424_vm4, %v1662_v40  ;;  %v918_v44 = vpop.permute.xlu1 %917 }
 0x2f8   : > { %1815 = vmatprep.mubr.msk.f32.mxu1 %vm2023_vm13, %v2013_v0 }
 0x2fb   : > { %v923_v42 = vpop.permute.xlu0 %922 }
 0x3ca   : > { %v1810_v43 = vpop.f32.mrb[0].mxu1 }
 0x3cb   : > { %v1913_v17 = vadd.f32 %v1810_v43, %v923_v42  ;;  %v1117_v45 = vpop.f32.mrb[1].mxu1 }
 0x3cc   : > { %v1914_v46 = vadd.f32 %v1117_v45, %v918_v44 }
 0x3cd   : > { %v1129_v47 = vmax.f32 %v1913_v17, 0.0 }
 0x3ce   : > { %v1128_v48 = vmax.f32 %v1914_v46, 0.0 }
 0x3cf   : > { %1137 = vrot.lane.b32.xlu0 %v1129_v47, %s2022_s19 }
 0x3d0   : > { %1135 = vrot.lane.b32.xlu1 %v1128_v48, %s2022_s19 }
 0x441   : > { %v1138_v49 = vpop.permute.xlu0 %1137 }
 0x442   : > { %1143 = vst.msk [vmem:[#allocation4 + $0x8] sm:$0xff] %vm1141_vm14, %v1138_v49  ;;  %v1136_v50 = vpop.permute.xlu1 %1135 }
 0x443   : > { %1142 = vst.msk [vmem:[#allocation4] sm:$0xff] %vm1141_vm14, %v1136_v50 }
 0x449   : > { %v1146_v51 = vld [vmem:[#allocation4 + $0x8] sm:$0xff] }
 0x44a   : > { %v1145_v52 = vld [vmem:[#allocation4] sm:$0xff] }
 0x44b   : > { %v2000_v53 = vpack.i.bf16 %v1146_v51, %v1145_v52  ;;  %v1901_v54 = vpack.c.bf16 %v1146_v51, %v1145_v52 }
 0x44d   : > { %2001 = vrot.lane.b32.xlu0 %v2000_v53, %s2024_s20  ;;  %1996 = vrot.lane.b32.xlu1 %v2000_v53, %s2020_s22  ;;  %s374_s22 = scalar_lea.vmem %s2303_s1, %s2093_s15  ;;  %s2025_s15 = smov 1  }
 0x44e   : > { %1902 = vmatpush3.bf16.msra.mxu1 %v1901_v54  ;;  %v1521_v16 = vld [vmem:[%s374_s22 + $0x8] sm:$0xff]  ;;  %v1520_v18 = vld [vmem:[%s374_s22] sm:$0xff]  ;;  %v1523_v19 = vld [vmem:[%s374_s22 + $0x18] sm:$0xf] }
 0x44f   : > { %1903 = vmatprep.subr.bf16.mxu1 %v2021_v41  ;;  %1526 = vst.msk [vmem:[%s2289_s12 + $0x8] sm:$0xff] %vm1524_vm0, %v1521_v16  ;;  %1525 = vst.msk [vmem:[%s2289_s12] sm:$0xff] %vm1524_vm0, %v1520_v18  ;;  %v1522_v20 = vld [vmem:[%s374_s22 + $0x10] sm:$0xff] }
 0x450   : > { %1529 = vst.msk [vmem:[%s2289_s12 + $0x18] sm:$0xf] %vm1528_vm1, %v1523_v19 }
 0x451   : > { %1405 = vperm.xlu0 %1973, %v1399_v55   ;;  %1224 = vperm.xlu1 %1974, %v1144_v56   ;;  %1527 = vst.msk [vmem:[%s2289_s12 + $0x10] sm:$0xff] %vm1524_vm0, %v1522_v20 }
 0x452   : > { %1816 = vmatmul.mubr.msk.f32.vlgmr.msra.gmra.mrb[2].mxu1 %vm1148_vm15, %v1147_v57 }
 0x453   : > { %1822 = vmatprep.mubr.msk.f32.mxu1 %vm2023_vm13, %v2013_v0 }
 0x455   : > { %1415 = vperm.xlu0 %1973, %v1401_v58   ;;  %1410 = vperm.xlu1 %1974, %v1400_v59  }
 0x459   : > { %1420 = vperm.xlu1 %1974, %v1402_v60  }
 0x4bf   : > { %v2002_v61 = vpop.permute.xlu0 %2001  ;;  %v1997_v62 = vpop.permute.xlu1 %1996 }
 0x4c0   : > { %v1999_v63 = vunpack.i.h.bf16 %v1997_v62  ;;  %v1998_v1 = vunpack.i.l.bf16 %v1997_v62  ;;  %v2004_v2 = vunpack.i.h.bf16 %v2002_v61  ;;  %v2003_v3 = vunpack.i.l.bf16 %v2002_v61 }
 0x4c2   : > { %v1904_v4 = vpack.c.bf16 %v1999_v63, %v1998_v1  ;;  %v1907_v6 = vpack.c.bf16 %v2004_v2, %v2003_v3 }
 0x4c4   : > { %1905 = vmatpush3.bf16.msra.mxu1 %v1904_v4 }
 0x4c5   : > { %1906 = vmatprep.subr.bf16.mxu1 %v2021_v41 }
 0x4c7   : > { %1823 = vmatmul.mubr.msk.f32.vlgmr.msra.gmra.mrb[2].mxu1 %vm1148_vm15, %v1667_v5 }
 0x4c8   : > { %1908 = vmatpush3.bf16.msra.mxu1 %v1907_v6  ;;  %1829 = vmatprep.mubr.msk.f32.mxu1 %vm2023_vm13, %v2013_v0  ;;  %v1396_v0 = vld [vmem:[%s2310_s8 + $0x8] sm:$0xff] }
 0x4cf   : > { %1830 = vmatmul.mubr.msk.f32.vlgmr.msra.gmra.mrb[2].mxu1 %vm1148_vm15, %v1669_v7 }
 0x4d0   : > { %v1225_v9 = vpop.permute.xlu1 %1224  ;;  %v1406_v22 = vpop.permute.xlu0 %1405 }
 0x4d4   : > { %v1411_v21 = vpop.permute.xlu1 %1410  ;;  %v1416_v29 = vpop.permute.xlu0 %1415 }
 0x4d8   : > { %v1421_v27 = vpop.permute.xlu1 %1420 }
 0x5a2   : > { %v1389_v10 = vpop.f32.mrb[2].mxu1 }
 0x5a3   : > { %v1915_v11 = vadd.f32 %v1389_v10, %v1225_v9  ;;  %v1831_v12 = vpop.f32.mrb[3].mxu1 }
 0x5a5   : > { %v1394_v13 = vmax.f32 %v1915_v11, 0.0 }
 0x5a7   : > { %1832 = vmatprep.subr.mxu0 %v1394_v13 }
 0x5a8   : > { %1833 = vmatpush3.msra.mxu0 %v1394_v13 }
 0x5a9   : > { %1835 = vmatmul.mubr.msk.f32.vlgmr.msra.gmra.mrb[4].mxu0 %vm1130_vm12, %v1396_v0 }
 0x5aa   : > { %1837 = vmatprep.mubr.msk.f32.mxu0 %vm1130_vm12, %v1397_v14 }
 0x5ad   : > { %1838 = vmatmul.mubr.msk.f32.gmra.mrb[6].mxu0 %vm1130_vm12, %v1398_v15 }
 0x67c   : > { %v1836_v23 = vpop.f32.mrb[4].mxu0 }
 0x67d   : > { %v1507_v24 = vadd.f32 %v1836_v23, %v1411_v21  ;;  %v1501_v25 = vpop.f32.mrb[5].mxu0 }
 0x67e   : > { %v1502_v26 = vadd.f32 %v1501_v25, %v1406_v22 }
 0x67f   : > { %1536 = vrot.lane.b32.xlu1 %v1507_v24, %s2025_s15 }
 0x680   : > { %v1839_v28 = vpop.f32.mrb[6].mxu0  ;;  %1534 = vrot.lane.b32.xlu0 %v1502_v26, %s2025_s15 }
 0x681   : > { %v1517_v30 = vadd.f32 %v1839_v28, %v1421_v27  ;;  %v1511_v31 = vpop.f32.mrb[7].mxu0 }
 0x682   : > { %v1512_v32 = vadd.f32 %v1511_v31, %v1416_v29 }
 0x683   : > { %1540 = vrot.lane.b32.xlu1 %v1517_v30, %s2025_s15 }
 0x684   : > { %1538 = vrot.lane.b32.xlu0 %v1512_v32, %s2025_s15 }
 0x6f1   : > { %v1537_v33 = vpop.permute.xlu1 %1536 }
 0x6f2   : > { %1548 = vst.msk [vmem:[%s2289_s12 + $0x8] sm:$0xff] %vm1546_vm2, %v1537_v33  ;;  %v1535_v34 = vpop.permute.xlu0 %1534 }
 0x6f3   : > { %1547 = vst.msk [vmem:[%s2289_s12] sm:$0xff] %vm1546_vm2, %v1535_v34 }
 0x6f5   : > { %v1541_v35 = vpop.permute.xlu1 %1540 }
 0x6f6   : > { %1551 = vst.msk [vmem:[%s2289_s12 + $0x18] sm:$0xf] %vm1550_vm3, %v1541_v35  ;;  %v1539_v36 = vpop.permute.xlu0 %1538 }
 0x6f7   : > { %1549 = vst.msk [vmem:[%s2289_s12 + $0x10] sm:$0xff] %vm1546_vm2, %v1539_v36 }
 0x6f8 PF: > { %s20_s13 = sadd.s32 1, %s2011_s13  }
 0x6f9   : > { %p17_p4 = scmp.ge.s32.totalorder %s20_s13, 4  }
 0x6fb   :  { %19 = sbr.rel (!%p17_p4) target bundleno = 1 (0x1), region = 99 }

</bundles_post_ra>
